<compile_context>
chip_gen: v7x
topology: tpu7x:2x2x1
jax: 0.10.0
libtpu: 0.0.40
codegen_flags: <defaults>
</compile_context>

<pallas_src>
import functools

import jax
import jax.numpy as jnp
from jax.experimental import pallas as pl
from jax.experimental.pallas import tpu as pltpu

_LANE = 128  # vreg lane width


def _round_up(x: int, m: int) -> int:
    return (x + m - 1) // m * m


def _num_tensorcores() -> int:
    """Best-effort TC-per-chip query (v7x has 2, v5e/v6e have 1)."""
    try:
        kind = jax.devices()[0].device_kind.lower()
        if "v7" in kind:
            return 2
    except Exception:
        pass
    return 1


def _pick_tile_rows(batch: int, n_tc: int) -> int:
    """Batch-tile rows: big tiles (target 512) to amortize per-step overhead,
    but keep the number of grid steps a multiple of n_tc (v7x megacore)."""
    if batch <= 8:
        return batch  # full-dim block (sublane dim == full array dim)
    target = 512
    steps = max(n_tc, pl.cdiv(batch, target))
    if n_tc > 1:
        steps = _round_up(steps, n_tc)
    tm = _round_up(pl.cdiv(batch, steps), 8)
    return min(tm, _round_up(batch, 8))


def mlp_kernel(x_ref, w1_ref, b1_ref, w2_ref, b2_ref, o_ref):
    # x_ref:  (TM, D_in)   f32   batch tile (cast to bf16 here, fused w/ load)
    # w1_ref: (D_in, Hp)   bf16  pre-transposed, hidden padded to 128 lanes
    # b1_ref: (1, Hp)      f32
    # w2_ref: (Hp, N_out)  bf16  pre-transposed, real (unpadded) output width
    # b2_ref: (1, N_out)   f32
    # o_ref:  (TM, N_out)  f32   real output width -> minimal HBM writeback
    x = x_ref[...].astype(jnp.bfloat16)
    h = jnp.dot(x, w1_ref[...], preferred_element_type=jnp.float32)
    h = jnp.maximum(h + b1_ref[...], 0.0)            # bias + ReLU in f32 (VPU)
    out = jnp.dot(h.astype(jnp.bfloat16), w2_ref[...],
                  preferred_element_type=jnp.float32)
    o_ref[...] = out + b2_ref[...]


def prepare_params(w1, b1, w2, b2):
    """One-time parameter prep (outside the per-call forward path).

    w1: (hidden, input_size), w2: (output_size, hidden) -- PyTorch Linear
    layout.  Returns transposed bf16 weights (hidden padded to a lane
    multiple; output width left at its real size) + f32 biases.
    """
    hidden, d_in = w1.shape
    out_size, _ = w2.shape
    hp = _round_up(hidden, _LANE)

    w1t = jnp.zeros((d_in, hp), jnp.bfloat16).at[:, :hidden].set(
        w1.T.astype(jnp.bfloat16))
    b1p = jnp.zeros((1, hp), jnp.float32).at[:, :hidden].set(
        b1.astype(jnp.float32))
    w2t = jnp.zeros((hp, out_size), jnp.bfloat16).at[:hidden, :].set(
        w2.T.astype(jnp.bfloat16))
    b2p = b2.reshape(1, out_size).astype(jnp.float32)
    return w1t, b1p, w2t, b2p


@jax.jit
def mlp_forward(x, w1t, b1p, w2t, b2p):
    """Fused MLP forward: relu(x @ W1 + b1) @ W2 + b2 (prepped params)."""
    batch, d_in = x.shape
    hp = w1t.shape[1]
    n_out = w2t.shape[1]

    tm = _pick_tile_rows(batch, _num_tensorcores())
    grid = (pl.cdiv(batch, tm),)

    flops = 2 * batch * (d_in * hp + hp * n_out)
    bytes_accessed = (batch * d_in * 4          # x (f32 read)
                      + batch * n_out * 4       # output (f32 write)
                      + w1t.size * 2 + w2t.size * 2
                      + (hp + n_out) * 4)       # biases

    return pl.pallas_call(
        mlp_kernel,
        out_shape=jax.ShapeDtypeStruct((batch, n_out), jnp.float32),
        grid=grid,
        in_specs=[
            pl.BlockSpec((tm, d_in), lambda i: (i, 0)),    # batch tile (f32)
            pl.BlockSpec((d_in, hp), lambda i: (0, 0)),    # resident weights
            pl.BlockSpec((1, hp),    lambda i: (0, 0)),
            pl.BlockSpec((hp, n_out), lambda i: (0, 0)),
            pl.BlockSpec((1, n_out),  lambda i: (0, 0)),
        ],
        out_specs=pl.BlockSpec((tm, n_out), lambda i: (i, 0)),
        compiler_params=pltpu.CompilerParams(
            dimension_semantics=("parallel",),   # megacore / v7x second TC
        ),
        cost_estimate=pl.CostEstimate(
            flops=flops, transcendentals=0, bytes_accessed=bytes_accessed),
    )(x, w1t, b1p, w2t, b2p)


if __name__ == "__main__":
    # Shapes consistent with BaseMLP.forward: (batch_size, input_size).
    input_size = 32
    hidden_size = 64
    output_size = 16

    key = jax.random.PRNGKey(0)
    kx, kw1, kb1, kw2, kb2 = jax.random.split(key, 5)

    # PyTorch Linear parameter shapes: (out, in) weights + (out,) biases.
    w1 = jax.random.normal(kw1, (hidden_size, input_size), dtype=jnp.float32) * 0.1
    b1 = jax.random.normal(kb1, (hidden_size,), dtype=jnp.float32) * 0.1
    w2 = jax.random.normal(kw2, (output_size, hidden_size), dtype=jnp.float32) * 0.1
    b2 = jax.random.normal(kb2, (output_size,), dtype=jnp.float32) * 0.1

    # One-time prep (transpose + pad + bf16 cast) -- not on the forward path.
    w1t, b1p, w2t, b2p = prepare_params(w1, b1, w2, b2)

    ok = True
    for batch_size in (256, 8):   # big tile path + tiny-batch (full-dim) path
        x = jax.random.normal(kx, (batch_size, input_size), dtype=jnp.float32)
        out = mlp_forward(x, w1t, b1p, w2t, b2p)
        out = jax.block_until_ready(out)

        # Pure-JAX f32 reference of the module semantics (bf16 MXU operands
        # => loosened tolerance).
        ref = jnp.maximum(x @ w1.T + b1, 0.0) @ w2.T + b2
        ok &= out.shape == (batch_size, output_size)
        ok &= bool(jnp.allclose(out, ref, atol=3e-2, rtol=3e-2))
        assert ok, (batch_size, float(jnp.max(jnp.abs(out - ref))))

    print("KERNEL_OK")
</pallas_src>

<mosaic_0001>
module attributes {stable_mosaic.version = 11 : i64} {
  func.func @mlp_kernel(%arg0: i32, %arg1: memref<256x32xf32, #tpu.memory_space<vmem>>, %arg2: memref<32x128xbf16, #tpu.memory_space<vmem>>, %arg3: memref<1x128xf32, #tpu.memory_space<vmem>>, %arg4: memref<128x16xbf16, #tpu.memory_space<vmem>>, %arg5: memref<1x16xf32, #tpu.memory_space<vmem>>, %arg6: memref<256x16xf32, #tpu.memory_space<vmem>>) attributes {dimension_semantics = [#tpu.dimension_semantics<parallel>], iteration_bounds = array<i64: 1>, scalar_prefetch = 0 : i64, scratch_operands = 0 : i64, tpu.core_type = #tpu.core_type<tc>, window_params = [{transform_indices = @transform_0, window_bounds = array<i64: 256, 32>}, {pipeline_mode = #tpu.pipeline_mode<synchronous>, transform_indices = @transform_1, window_bounds = array<i64: 32, 128>}, {pipeline_mode = #tpu.pipeline_mode<synchronous>, transform_indices = @transform_2, window_bounds = array<i64: 1, 128>}, {pipeline_mode = #tpu.pipeline_mode<synchronous>, transform_indices = @transform_3, window_bounds = array<i64: 128, 16>}, {pipeline_mode = #tpu.pipeline_mode<synchronous>, transform_indices = @transform_4, window_bounds = array<i64: 1, 16>}, {transform_indices = @transform_5, window_bounds = array<i64: 256, 16>}]} {
    %c0 = arith.constant 0 : index
    %c0_0 = arith.constant 0 : index
    %0 = vector.load %arg1[%c0, %c0_0] : memref<256x32xf32, #tpu.memory_space<vmem>>, vector<256x32xf32>
    %1 = arith.truncf %0 : vector<256x32xf32> to vector<256x32xbf16>
    %c0_1 = arith.constant 0 : index
    %c0_2 = arith.constant 0 : index
    %2 = vector.load %arg2[%c0_1, %c0_2] : memref<32x128xbf16, #tpu.memory_space<vmem>>, vector<32x128xbf16>
    %cst = arith.constant dense<0.000000e+00> : vector<256x128xf32>
    %3 = tpu.matmul %1, %2, %cst {dimension_numbers = #tpu.dot_dimension_numbers<[1], [0], [0], [1], [0, 0, 1, 1], [], []>} : vector<256x32xbf16>, vector<32x128xbf16>, vector<256x128xf32> -> vector<256x128xf32>
    %c0_3 = arith.constant 0 : index
    %c0_4 = arith.constant 0 : index
    %4 = vector.load %arg3[%c0_3, %c0_4] : memref<1x128xf32, #tpu.memory_space<vmem>>, vector<1x128xf32>
    %5 = vector.broadcast %4 : vector<1x128xf32> to vector<256x128xf32>
    %6 = arith.addf %3, %5 : vector<256x128xf32>
    %cst_5 = arith.constant 0.000000e+00 : f32
    %7 = vector.broadcast %cst_5 : f32 to vector<256x128xf32>
    %8 = arith.maximumf %6, %7 : vector<256x128xf32>
    %9 = arith.truncf %8 : vector<256x128xf32> to vector<256x128xbf16>
    %c0_6 = arith.constant 0 : index
    %c0_7 = arith.constant 0 : index
    %10 = vector.load %arg4[%c0_6, %c0_7] : memref<128x16xbf16, #tpu.memory_space<vmem>>, vector<128x16xbf16>
    %cst_8 = arith.constant dense<0.000000e+00> : vector<256x16xf32>
    %11 = tpu.matmul %9, %10, %cst_8 {dimension_numbers = #tpu.dot_dimension_numbers<[1], [0], [0], [1], [0, 0, 1, 1], [], []>} : vector<256x128xbf16>, vector<128x16xbf16>, vector<256x16xf32> -> vector<256x16xf32>
    %c0_9 = arith.constant 0 : index
    %c0_10 = arith.constant 0 : index
    %12 = vector.load %arg5[%c0_9, %c0_10] : memref<1x16xf32, #tpu.memory_space<vmem>>, vector<1x16xf32>
    %13 = vector.broadcast %12 : vector<1x16xf32> to vector<256x16xf32>
    %14 = arith.addf %11, %13 : vector<256x16xf32>
    %c0_11 = arith.constant 0 : index
    %c0_12 = arith.constant 0 : index
    %15 = vector.load %arg6[%c0_11, %c0_12] : memref<256x16xf32, #tpu.memory_space<vmem>>, vector<256x16xf32>
    tpu.vector_store %arg6[%c0_11, %c0_12], %14 {strides = array<i32>} : memref<256x16xf32, #tpu.memory_space<vmem>>, vector<256x16xf32>,
    return
  }
  func.func @transform_0(%arg0: i32) -> (i32, i32) {
    %c0_i32 = arith.constant 0 : i32
    %c0_i32_0 = arith.constant 0 : i32
    return %arg0, %c0_i32 : i32, i32
  }
  func.func @transform_1(%arg0: i32) -> (i32, i32) {
    %c0_i32 = arith.constant 0 : i32
    %c0_i32_0 = arith.constant 0 : i32
    %c0_i32_1 = arith.constant 0 : i32
    return %c0_i32, %c0_i32_0 : i32, i32
  }
  func.func @transform_2(%arg0: i32) -> (i32, i32) {
    %c0_i32 = arith.constant 0 : i32
    %c0_i32_0 = arith.constant 0 : i32
    %c0_i32_1 = arith.constant 0 : i32
    return %c0_i32, %c0_i32_0 : i32, i32
  }
  func.func @transform_3(%arg0: i32) -> (i32, i32) {
    %c0_i32 = arith.constant 0 : i32
    %c0_i32_0 = arith.constant 0 : i32
    %c0_i32_1 = arith.constant 0 : i32
    return %c0_i32, %c0_i32_0 : i32, i32
  }
  func.func @transform_4(%arg0: i32) -> (i32, i32) {
    %c0_i32 = arith.constant 0 : i32
    %c0_i32_0 = arith.constant 0 : i32
    %c0_i32_1 = arith.constant 0 : i32
    return %c0_i32, %c0_i32_0 : i32, i32
  }
  func.func @transform_5(%arg0: i32) -> (i32, i32) {
    %c0_i32 = arith.constant 0 : i32
    %c0_i32_0 = arith.constant 0 : i32
    return %arg0, %c0_i32 : i32, i32
  }
}

</mosaic_0001>

<bundles_post_ra>
// kernel: mlp_forward.1
= control target key start
LH: loop header
LB: loop body
LE: loop exit
PB: predicated region body
PF: predicated region fallthrough
CT: control target
= control target key end

     0   :  { %vm92_vm0 = vcmask 261120   ;;  %vm582_vm1 = vcmask 130048   ;;  %s1173_s1 = inlined_call_operand.vmem [shape: bf16[32,128], index: 1, kind: input, shape index: {}]   ;;  %s1174_s0 = inlined_call_operand.vmem [shape: f32[256,32], index: 0, kind: input, shape index: {}]   ;;  %s1175_s3 = inlined_call_operand.vmem [shape: bf16[128,16], index: 3, kind: input, shape index: {}]   ;;  %s1176_s2 = inlined_call_operand.vmem [shape: f32[1,128], index: 2, kind: input, shape index: {}]   ;;  %s1177_s4 = inlined_call_operand.vmem [shape: f32[1,16], index: 4, kind: input, shape index: {}]   ;;  %s1178_s5 = inlined_call_operand.vmem [shape: f32[256,16], index: 5, kind: output, shape index: {}]  }
   0x1   :  { %v789_v0 = vld [vmem:[%s1173_s1] sm:$0xff]   ;;  %v790_v1 = vld [vmem:[%s1173_s1 + $0x8] sm:$0xff]   ;;  %v23_v5 = vld [vmem:[%s1174_s0 + $0x10] sm:$0xff] }
   0x2   :  { %689 = vmatprep.subr.bf16.mxu0 %v789_v0  ;;  %v21_v2 = vld [vmem:[%s1174_s0] sm:$0xff]  ;;  %v22_v3 = vld [vmem:[%s1174_s0 + $0x8] sm:$0xff]  ;;  %v24_v6 = vld [vmem:[%s1174_s0 + $0x18] sm:$0xff] }
   0x3   :  { %690 = vmatpush3.bf16.msra.mxu0 %v789_v0  ;;  %v53_v4 = vpack.c.bf16 %v22_v3, %v21_v2  ;;  %v25_v7 = vld [vmem:[%s1174_s0 + $0x20] sm:$0xff]  ;;  %v26_v8 = vld [vmem:[%s1174_s0 + $0x28] sm:$0xff]  ;;  %v54_v9 = vpack.c.bf16 %v24_v6, %v23_v5  ;;  %v27_v11 = vld [vmem:[%s1174_s0 + $0x30] sm:$0xff] }
   0x4   :  { %691 = vmatprep.subr.bf16.mxu0 %v790_v1  ;;  %v55_v10 = vpack.c.bf16 %v26_v8, %v25_v7  ;;  %v28_v12 = vld [vmem:[%s1174_s0 + $0x38] sm:$0xff]  ;;  %v29_v13 = vld [vmem:[%s1174_s0 + $0x40] sm:$0xff]  ;;  %v30_v14 = vld [vmem:[%s1174_s0 + $0x48] sm:$0xff] }
   0x5   :  { %693 = vmatprep.mubr.msk.bf16.mxu0 %vm92_vm0, %v53_v4  ;;  %v791_v15 = vld [vmem:[%s1175_s3] sm:$0xff]   ;;  %v56_v16 = vpack.c.bf16 %v28_v12, %v27_v11  ;;  %v792_v17 = vld [vmem:[%s1175_s3 + $0x8] sm:$0xff]   ;;  %v57_v18 = vpack.c.bf16 %v30_v14, %v29_v13  ;;  %v31_v19 = vld [vmem:[%s1174_s0 + $0x50] sm:$0xff] }
   0x6   :  { %773 = vmatprep.subr.bf16.mxu1 %v791_v15  ;;  %v793_v20 = vld [vmem:[%s1175_s3 + $0x10] sm:$0xff]   ;;  %v32_v21 = vld [vmem:[%s1174_s0 + $0x58] sm:$0xff]  ;;  %v33_v22 = vld [vmem:[%s1174_s0 + $0x60] sm:$0xff] }
   0x7   :  { %692 = vmatpush3.bf16.msra.mxu0 %v790_v1  ;;  %781 = vmatpush3.bf16.msra.mxu1 %v791_v15  ;;  %v34_v23 = vld [vmem:[%s1174_s0 + $0x68] sm:$0xff]  ;;  %v794_v24 = vld [vmem:[%s1175_s3 + $0x18] sm:$0xff]   ;;  %v58_v25 = vpack.c.bf16 %v32_v21, %v31_v19  ;;  %v795_v27 = vld [vmem:[%s1175_s3 + $0x20] sm:$0xff]  }
   0x8   :  { %725 = vmatprep.subr.bf16.mxu0 %v791_v15  ;;  %774 = vmatprep.subr.bf16.mxu1 %v792_v17  ;;  %v59_v26 = vpack.c.bf16 %v34_v23, %v33_v22  ;;  %v35_v28 = vld [vmem:[%s1174_s0 + $0x70] sm:$0xff]  ;;  %v36_v29 = vld [vmem:[%s1174_s0 + $0x78] sm:$0xff]  ;;  %v37_v30 = vld [vmem:[%s1174_s0 + $0x80] sm:$0xff] }
   0x9   :  { %v38_v31 = vld [vmem:[%s1174_s0 + $0x88] sm:$0xff]  ;;  %v60_v33 = vpack.c.bf16 %v36_v29, %v35_v28  ;;  %v39_v35 = vld [vmem:[%s1174_s0 + $0x90] sm:$0xff]  ;;  %v40_v36 = vld [vmem:[%s1174_s0 + $0x98] sm:$0xff] }
   0xa   :  { %694 = vmatmul.mubr.msk.bf16.vlgmr.msra.gmra.mrb[0].mxu0 %vm92_vm0, %v54_v9  ;;  %v796_v32 = vld [vmem:[%s1175_s3 + $0x28] sm:$0xff]   ;;  %v61_v34 = vpack.c.bf16 %v38_v31, %v37_v30  ;;  %v41_v37 = vld [vmem:[%s1174_s0 + $0xa0] sm:$0xff]  ;;  %v62_v39 = vpack.c.bf16 %v40_v36, %v39_v35  ;;  %v43_v41 = vld [vmem:[%s1174_s0 + $0xb0] sm:$0xff] }
   0xb   :  { %697 = vmatprep.mubr.msk.bf16.mxu0 %vm92_vm0, %v55_v10  ;;  %726 = vmatpush3.bf16.msra.mxu0 %v791_v15  ;;  %v42_v38 = vld [vmem:[%s1174_s0 + $0xa8] sm:$0xff]  ;;  %v44_v42 = vld [vmem:[%s1174_s0 + $0xb8] sm:$0xff]  ;;  %v45_v43 = vld [vmem:[%s1174_s0 + $0xc0] sm:$0xff] }
   0xc   :  { %727 = vmatprep.subr.bf16.mxu0 %v792_v17  ;;  %782 = vmatpush3.bf16.msra.mxu1 %v792_v17  ;;  %v63_v40 = vpack.c.bf16 %v42_v38, %v41_v37  ;;  %v46_v44 = vld [vmem:[%s1174_s0 + $0xc8] sm:$0xff]  ;;  %v64_v45 = vpack.c.bf16 %v44_v42, %v43_v41  ;;  %v47_v47 = vld [vmem:[%s1174_s0 + $0xd0] sm:$0xff]  ;;  %v48_v48 = vld [vmem:[%s1174_s0 + $0xd8] sm:$0xff] }
   0xd   :  { %775 = vmatprep.subr.bf16.mxu1 %v793_v20  ;;  %v65_v46 = vpack.c.bf16 %v46_v44, %v45_v43  ;;  %v49_v49 = vld [vmem:[%s1174_s0 + $0xe0] sm:$0xff]  ;;  %v50_v50 = vld [vmem:[%s1174_s0 + $0xe8] sm:$0xff]  ;;  %v66_v51 = vpack.c.bf16 %v48_v48, %v47_v47  ;;  %v51_v53 = vld [vmem:[%s1174_s0 + $0xf0] sm:$0xff] }
   0xe   :  { %v67_v52 = vpack.c.bf16 %v50_v50, %v49_v49  ;;  %v52_v54 = vld [vmem:[%s1174_s0 + $0xf8] sm:$0xff]  ;;  %v797_v56 = vld [vmem:[%s1175_s3 + $0x30] sm:$0xff]   ;;  %v974_v58 = vld [vmem:[%s1176_s2] ss:$0 sm:$0xff] }
   0xf   :  { %728 = vmatpush3.bf16.msra.mxu0 %v792_v17  ;;  %v68_v55 = vpack.c.bf16 %v52_v54, %v51_v53  ;;  %v798_v57 = vld [vmem:[%s1175_s3 + $0x38] sm:$0xff]  }
  0x10   :  { %729 = vmatprep.subr.bf16.mxu0 %v793_v20  ;;  %783 = vmatpush3.bf16.msra.mxu1 %v793_v20 }
  0x11   :  { %776 = vmatprep.subr.bf16.mxu1 %v794_v24 }
  0x12   :  { %698 = vmatmul.mubr.msk.bf16.gmra.mrb[4].mxu0 %vm92_vm0, %v56_v16 }
  0x13   :  { %701 = vmatprep.mubr.msk.bf16.mxu0 %vm92_vm0, %v57_v18  ;;  %730 = vmatpush3.bf16.msra.mxu0 %v793_v20 }
  0x14   :  { %731 = vmatprep.subr.bf16.mxu0 %v794_v24  ;;  %784 = vmatpush3.bf16.msra.mxu1 %v794_v24 }
  0x15   :  { %777 = vmatprep.subr.bf16.mxu1 %v795_v27 }
  0x17   :  { %732 = vmatpush3.bf16.msra.mxu0 %v794_v24 }
  0x18   :  { %733 = vmatprep.subr.bf16.mxu0 %v795_v27  ;;  %785 = vmatpush3.bf16.msra.mxu1 %v795_v27 }
  0x19   :  { %778 = vmatprep.subr.bf16.mxu1 %v796_v32 }
  0x1a   :  { %702 = vmatmul.mubr.msk.bf16.gmra.mrb[8].mxu0 %vm92_vm0, %v58_v25 }
  0x1b   :  { %705 = vmatprep.mubr.msk.bf16.mxu0 %vm92_vm0, %v59_v26  ;;  %734 = vmatpush3.bf16.msra.mxu0 %v795_v27 }
  0x1c   :  { %735 = vmatprep.subr.bf16.mxu0 %v796_v32  ;;  %786 = vmatpush3.bf16.msra.mxu1 %v796_v32 }
  0x1d   :  { %779 = vmatprep.subr.bf16.mxu1 %v797_v56 }
  0x1f   :  { %736 = vmatpush3.bf16.msra.mxu0 %v796_v32 }
  0x20   :  { %737 = vmatprep.subr.bf16.mxu0 %v797_v56  ;;  %787 = vmatpush3.bf16.msra.mxu1 %v797_v56 }
  0x21   :  { %780 = vmatprep.subr.bf16.mxu1 %v798_v57 }
  0x22   :  { %706 = vmatmul.mubr.msk.bf16.gmra.mrb[12].mxu0 %vm92_vm0, %v60_v33 }
  0x23   :  { %709 = vmatprep.mubr.msk.bf16.mxu0 %vm92_vm0, %v61_v34  ;;  %738 = vmatpush3.bf16.msra.mxu0 %v797_v56 }
  0x24   :  { %739 = vmatprep.subr.bf16.mxu0 %v798_v57  ;;  %788 = vmatpush3.bf16.msra.mxu1 %v798_v57 }
  0x27   :  { %740 = vmatpush3.bf16.msra.mxu0 %v798_v57 }
  0x2a   :  { %710 = vmatmul.mubr.msk.bf16.gmra.mrb[16].mxu0 %vm92_vm0, %v62_v39 }
  0x2b   :  { %713 = vmatprep.mubr.msk.bf16.mxu0 %vm92_vm0, %v63_v40 }
  0x32   :  { %714 = vmatmul.mubr.msk.bf16.gmra.mrb[20].mxu0 %vm92_vm0, %v64_v45 }
  0x33   :  { %717 = vmatprep.mubr.msk.bf16.mxu0 %vm92_vm0, %v65_v46 }
  0x3a   :  { %718 = vmatmul.mubr.msk.bf16.gmra.mrb[24].mxu0 %vm92_vm0, %v66_v51 }
  0x3b   :  { %721 = vmatprep.mubr.msk.bf16.mxu0 %vm92_vm0, %v67_v52 }
  0x42   :  { %722 = vmatmul.mubr.msk.bf16.gmra.mrb[28].mxu0 %vm92_vm0, %v68_v55 }
  0xdd   :  { %v695_v59 = vpop.f32.mrb[0].mxu0 }
  0xde   :  { %v184_v60 = vadd.f32 %v695_v59, %v974_v58  ;;  %v175_v61 = vpop.f32.mrb[1].mxu0 }
  0xdf   :  { %v176_v62 = vadd.f32 %v974_v58, %v175_v61  ;;  %v696_v63 = vpop.f32.mrb[2].mxu0 }
  0xe0   :  { %v187_v0 = vadd.f32 %v696_v63, %v974_v58  ;;  %v178_v1 = vpop.f32.mrb[3].mxu0  ;;  %v304_v3 = vmax.f32 %v184_v60, 0.0 }
  0xe1   :  { %v179_v2 = vadd.f32 %v974_v58, %v178_v1  ;;  %v302_v5 = vmax.f32 %v176_v62, 0.0 }
  0xe2   :  { %v305_v4 = vmax.f32 %v187_v0, 0.0 }
  0xe3   :  { %v303_v6 = vmax.f32 %v179_v2, 0.0 }
  0xe4   :  { %v335_v7 = vpack.c.bf16 %v305_v4, %v304_v3 }
  0xe5   :  { %v334_v8 = vpack.c.bf16 %v303_v6, %v302_v5  ;;  %v699_v9 = vpop.f32.mrb[4].mxu0 }
  0xe6   :  { %v200_v10 = vadd.f32 %v699_v9, %v974_v58  ;;  %v191_v11 = vpop.f32.mrb[5].mxu0 }
  0xe7   :  { %v192_v12 = vadd.f32 %v974_v58, %v191_v11  ;;  %v700_v13 = vpop.f32.mrb[6].mxu0  ;;  %741 = vmatprep.mubr.bf16.mxu0 %v334_v8 }
  0xe8   :  { %v203_v14 = vadd.f32 %v700_v13, %v974_v58  ;;  %v194_v15 = vpop.f32.mrb[7].mxu0  ;;  %742 = vmatmul.mubr.bf16.vlgmr.msra.gmra.mrb[32].mxu0 %v335_v7  ;;  %v308_v17 = vmax.f32 %v200_v10, 0.0 }
  0xe9   :  { %v195_v16 = vadd.f32 %v974_v58, %v194_v15  ;;  %v306_v19 = vmax.f32 %v192_v12, 0.0 }
  0xea   :  { %v309_v18 = vmax.f32 %v203_v14, 0.0 }
  0xeb   :  { %v307_v20 = vmax.f32 %v195_v16, 0.0 }
  0xec   :  { %v337_v21 = vpack.c.bf16 %v309_v18, %v308_v17 }
  0xed   :  { %v703_v22 = vpop.f32.mrb[8].mxu0  ;;  %v336_v23 = vpack.c.bf16 %v307_v20, %v306_v19 }
  0xee   :  { %v216_v24 = vadd.f32 %v703_v22, %v974_v58  ;;  %v207_v25 = vpop.f32.mrb[9].mxu0 }
  0xef   :  { %v208_v26 = vadd.f32 %v974_v58, %v207_v25  ;;  %v704_v27 = vpop.f32.mrb[10].mxu0  ;;  %745 = vmatprep.mubr.bf16.mxu1 %v336_v23 }
  0xf0   :  { %v219_v28 = vadd.f32 %v704_v27, %v974_v58  ;;  %v210_v29 = vpop.f32.mrb[11].mxu0  ;;  %746 = vmatmul.mubr.bf16.vlgmr.msra.gmra.mrb[0].mxu1 %v337_v21  ;;  %v312_v31 = vmax.f32 %v216_v24, 0.0 }
  0xf1   :  { %v211_v30 = vadd.f32 %v974_v58, %v210_v29  ;;  %v310_v33 = vmax.f32 %v208_v26, 0.0 }
  0xf2   :  { %v313_v32 = vmax.f32 %v219_v28, 0.0 }
  0xf3   :  { %v311_v34 = vmax.f32 %v211_v30, 0.0 }
  0xf4   :  { %v339_v35 = vpack.c.bf16 %v313_v32, %v312_v31 }
  0xf5   :  { %v338_v36 = vpack.c.bf16 %v311_v34, %v310_v33  ;;  %v707_v37 = vpop.f32.mrb[12].mxu0 }
  0xf6   :  { %v232_v38 = vadd.f32 %v707_v37, %v974_v58  ;;  %v223_v39 = vpop.f32.mrb[13].mxu0 }
  0xf7   :  { %v224_v40 = vadd.f32 %v974_v58, %v223_v39  ;;  %v708_v41 = vpop.f32.mrb[14].mxu0  ;;  %749 = vmatprep.mubr.bf16.mxu1 %v338_v36 }
  0xf8   :  { %v235_v42 = vadd.f32 %v708_v41, %v974_v58  ;;  %v226_v43 = vpop.f32.mrb[15].mxu0  ;;  %750 = vmatmul.mubr.bf16.gmra.mrb[4].mxu1 %v339_v35  ;;  %v316_v45 = vmax.f32 %v232_v38, 0.0 }
  0xf9   :  { %v227_v44 = vadd.f32 %v974_v58, %v226_v43  ;;  %v314_v47 = vmax.f32 %v224_v40, 0.0 }
  0xfa   :  { %v317_v46 = vmax.f32 %v235_v42, 0.0 }
  0xfb   :  { %v315_v48 = vmax.f32 %v227_v44, 0.0  ;;  %v1011_v44 = vld [vmem:[%s1177_s4] ss:$0 sm:$0xff] }
  0xfc   :  { %v341_v49 = vpack.c.bf16 %v317_v46, %v316_v45 }
  0xfd   :  { %v340_v50 = vpack.c.bf16 %v315_v48, %v314_v47  ;;  %v711_v51 = vpop.f32.mrb[16].mxu0 }
  0xfe   :  { %v248_v52 = vadd.f32 %v711_v51, %v974_v58  ;;  %v239_v53 = vpop.f32.mrb[17].mxu0 }
  0xff   :  { %v240_v54 = vadd.f32 %v974_v58, %v239_v53  ;;  %v712_v55 = vpop.f32.mrb[18].mxu0  ;;  %753 = vmatprep.mubr.bf16.mxu1 %v340_v50 }
 0x100   :  { %v251_v56 = vadd.f32 %v712_v55, %v974_v58  ;;  %v242_v57 = vpop.f32.mrb[19].mxu0  ;;  %754 = vmatmul.mubr.bf16.gmra.mrb[8].mxu1 %v341_v49  ;;  %v320_v60 = vmax.f32 %v248_v52, 0.0 }
 0x101   :  { %v243_v59 = vadd.f32 %v974_v58, %v242_v57  ;;  %v318_v62 = vmax.f32 %v240_v54, 0.0 }
 0x102   :  { %v321_v61 = vmax.f32 %v251_v56, 0.0 }
 0x103   :  { %v319_v63 = vmax.f32 %v243_v59, 0.0 }
 0x104   :  { %v343_v0 = vpack.c.bf16 %v321_v61, %v320_v60 }
 0x105   :  { %v342_v1 = vpack.c.bf16 %v319_v63, %v318_v62  ;;  %v715_v2 = vpop.f32.mrb[20].mxu0 }
 0x106   :  { %v264_v3 = vadd.f32 %v715_v2, %v974_v58  ;;  %v255_v4 = vpop.f32.mrb[21].mxu0 }
 0x107   :  { %v256_v5 = vadd.f32 %v974_v58, %v255_v4  ;;  %v716_v6 = vpop.f32.mrb[22].mxu0  ;;  %757 = vmatprep.mubr.bf16.mxu1 %v342_v1 }
 0x108   :  { %v267_v7 = vadd.f32 %v716_v6, %v974_v58  ;;  %v258_v8 = vpop.f32.mrb[23].mxu0  ;;  %758 = vmatmul.mubr.bf16.gmra.mrb[12].mxu1 %v343_v0  ;;  %v324_v10 = vmax.f32 %v264_v3, 0.0 }
 0x109   :  { %v259_v9 = vadd.f32 %v974_v58, %v258_v8  ;;  %v322_v12 = vmax.f32 %v256_v5, 0.0 }
 0x10a   :  { %v325_v11 = vmax.f32 %v267_v7, 0.0 }
 0x10b   :  { %v323_v13 = vmax.f32 %v259_v9, 0.0 }
 0x10c   :  { %v345_v14 = vpack.c.bf16 %v325_v11, %v324_v10 }
 0x10d   :  { %v344_v15 = vpack.c.bf16 %v323_v13, %v322_v12  ;;  %v719_v16 = vpop.f32.mrb[24].mxu0 }
 0x10e   :  { %v280_v17 = vadd.f32 %v719_v16, %v974_v58  ;;  %v271_v18 = vpop.f32.mrb[25].mxu0 }
 0x10f   :  { %v272_v19 = vadd.f32 %v974_v58, %v271_v18  ;;  %v720_v20 = vpop.f32.mrb[26].mxu0  ;;  %761 = vmatprep.mubr.bf16.mxu1 %v344_v15 }
 0x110   :  { %v283_v21 = vadd.f32 %v720_v20, %v974_v58  ;;  %v274_v22 = vpop.f32.mrb[27].mxu0  ;;  %762 = vmatmul.mubr.bf16.gmra.mrb[16].mxu1 %v345_v14  ;;  %v328_v24 = vmax.f32 %v280_v17, 0.0 }
 0x111   :  { %v275_v23 = vadd.f32 %v974_v58, %v274_v22  ;;  %v326_v26 = vmax.f32 %v272_v19, 0.0 }
 0x112   :  { %v329_v25 = vmax.f32 %v283_v21, 0.0 }
 0x113   :  { %v327_v27 = vmax.f32 %v275_v23, 0.0 }
 0x114   :  { %v347_v28 = vpack.c.bf16 %v329_v25, %v328_v24 }
 0x115   :  { %v346_v29 = vpack.c.bf16 %v327_v27, %v326_v26  ;;  %v723_v30 = vpop.f32.mrb[28].mxu0 }
 0x116   :  { %v296_v31 = vadd.f32 %v723_v30, %v974_v58  ;;  %v287_v32 = vpop.f32.mrb[29].mxu0 }
 0x117   :  { %v288_v33 = vadd.f32 %v974_v58, %v287_v32  ;;  %v724_v34 = vpop.f32.mrb[30].mxu0  ;;  %765 = vmatprep.mubr.bf16.mxu1 %v346_v29 }
 0x118   :  { %v299_v35 = vadd.f32 %v724_v34, %v974_v58  ;;  %v290_v36 = vpop.f32.mrb[31].mxu0  ;;  %766 = vmatmul.mubr.bf16.gmra.mrb[20].mxu1 %v347_v28  ;;  %v332_v38 = vmax.f32 %v296_v31, 0.0 }
 0x119   :  { %v291_v37 = vadd.f32 %v974_v58, %v290_v36  ;;  %v330_v40 = vmax.f32 %v288_v33, 0.0 }
 0x11a   :  { %v333_v39 = vmax.f32 %v299_v35, 0.0 }
 0x11b   :  { %v331_v41 = vmax.f32 %v291_v37, 0.0 }
 0x11c   :  { %v349_v42 = vpack.c.bf16 %v333_v39, %v332_v38 }
 0x11d   :  { %v348_v43 = vpack.c.bf16 %v331_v41, %v330_v40 }
 0x11f   :  { %769 = vmatprep.mubr.bf16.mxu1 %v348_v43 }
 0x120   :  { %770 = vmatmul.mubr.bf16.gmra.mrb[24].mxu1 %v349_v42 }
 0x1bb   :  { %v743_v45 = vpop.f32.mrb[32].mxu0 }
 0x1bc   :  { %v464_v46 = vadd.f32 %v743_v45, %v1011_v44  ;;  %v455_v47 = vpop.f32.mrb[33].mxu0 }
 0x1bd   :  { %v456_v58 = vadd.f32 %v1011_v44, %v455_v47  ;;  %v744_v48 = vpop.f32.mrb[34].mxu0 }
 0x1be   :  { %585 = vst.msk [vmem:[%s1178_s5 + $0x10] sm:$0xff] %vm582_vm1, %v464_v46  ;;  %v467_v49 = vadd.f32 %v744_v48, %v1011_v44  ;;  %v458_v50 = vpop.f32.mrb[35].mxu0 }
 0x1bf   :  { %583 = vst.msk [vmem:[%s1178_s5] sm:$0xff] %vm582_vm1, %v456_v58  ;;  %v459_v51 = vadd.f32 %v1011_v44, %v458_v50 }
 0x1c0   :  { %586 = vst.msk [vmem:[%s1178_s5 + $0x18] sm:$0xff] %vm582_vm1, %v467_v49 }
 0x1c1   :  { %584 = vst.msk [vmem:[%s1178_s5 + $0x8] sm:$0xff] %vm582_vm1, %v459_v51 }
 0x1c3   :  { %v747_v52 = vpop.f32.mrb[0].mxu1 }
 0x1c4   :  { %v480_v53 = vadd.f32 %v747_v52, %v1011_v44  ;;  %v471_v54 = vpop.f32.mrb[1].mxu1 }
 0x1c5   :  { %v472_v55 = vadd.f32 %v1011_v44, %v471_v54  ;;  %v748_v56 = vpop.f32.mrb[2].mxu1 }
 0x1c6   :  { %589 = vst.msk [vmem:[%s1178_s5 + $0x30] sm:$0xff] %vm582_vm1, %v480_v53  ;;  %v483_v57 = vadd.f32 %v748_v56, %v1011_v44  ;;  %v474_v59 = vpop.f32.mrb[3].mxu1 }
 0x1c7   :  { %587 = vst.msk [vmem:[%s1178_s5 + $0x20] sm:$0xff] %vm582_vm1, %v472_v55  ;;  %v475_v60 = vadd.f32 %v1011_v44, %v474_v59 }
 0x1c8   :  { %590 = vst.msk [vmem:[%s1178_s5 + $0x38] sm:$0xff] %vm582_vm1, %v483_v57 }
 0x1c9   :  { %588 = vst.msk [vmem:[%s1178_s5 + $0x28] sm:$0xff] %vm582_vm1, %v475_v60 }
 0x1cb   :  { %v751_v61 = vpop.f32.mrb[4].mxu1 }
 0x1cc   :  { %v496_v62 = vadd.f32 %v751_v61, %v1011_v44  ;;  %v487_v63 = vpop.f32.mrb[5].mxu1 }
 0x1cd   :  { %v488_v0 = vadd.f32 %v1011_v44, %v487_v63  ;;  %v752_v1 = vpop.f32.mrb[6].mxu1 }
 0x1ce   :  { %593 = vst.msk [vmem:[%s1178_s5 + $0x50] sm:$0xff] %vm582_vm1, %v496_v62  ;;  %v499_v2 = vadd.f32 %v752_v1, %v1011_v44  ;;  %v490_v3 = vpop.f32.mrb[7].mxu1 }
 0x1cf   :  { %591 = vst.msk [vmem:[%s1178_s5 + $0x40] sm:$0xff] %vm582_vm1, %v488_v0  ;;  %v491_v4 = vadd.f32 %v1011_v44, %v490_v3 }
 0x1d0   :  { %594 = vst.msk [vmem:[%s1178_s5 + $0x58] sm:$0xff] %vm582_vm1, %v499_v2 }
 0x1d1   :  { %592 = vst.msk [vmem:[%s1178_s5 + $0x48] sm:$0xff] %vm582_vm1, %v491_v4 }
 0x1d3   :  { %v755_v5 = vpop.f32.mrb[8].mxu1 }
 0x1d4   :  { %v512_v6 = vadd.f32 %v755_v5, %v1011_v44  ;;  %v503_v7 = vpop.f32.mrb[9].mxu1 }
 0x1d5   :  { %v504_v8 = vadd.f32 %v1011_v44, %v503_v7  ;;  %v756_v9 = vpop.f32.mrb[10].mxu1 }
 0x1d6   :  { %597 = vst.msk [vmem:[%s1178_s5 + $0x70] sm:$0xff] %vm582_vm1, %v512_v6  ;;  %v515_v10 = vadd.f32 %v756_v9, %v1011_v44  ;;  %v506_v11 = vpop.f32.mrb[11].mxu1 }
 0x1d7   :  { %595 = vst.msk [vmem:[%s1178_s5 + $0x60] sm:$0xff] %vm582_vm1, %v504_v8  ;;  %v507_v12 = vadd.f32 %v1011_v44, %v506_v11 }
 0x1d8   :  { %598 = vst.msk [vmem:[%s1178_s5 + $0x78] sm:$0xff] %vm582_vm1, %v515_v10 }
 0x1d9   :  { %596 = vst.msk [vmem:[%s1178_s5 + $0x68] sm:$0xff] %vm582_vm1, %v507_v12 }
 0x1db   :  { %v759_v13 = vpop.f32.mrb[12].mxu1 }
 0x1dc   :  { %v528_v14 = vadd.f32 %v759_v13, %v1011_v44  ;;  %v519_v15 = vpop.f32.mrb[13].mxu1 }
 0x1dd   :  { %v520_v16 = vadd.f32 %v1011_v44, %v519_v15  ;;  %v760_v17 = vpop.f32.mrb[14].mxu1 }
 0x1de   :  { %601 = vst.msk [vmem:[%s1178_s5 + $0x90] sm:$0xff] %vm582_vm1, %v528_v14  ;;  %v531_v18 = vadd.f32 %v760_v17, %v1011_v44  ;;  %v522_v19 = vpop.f32.mrb[15].mxu1 }
 0x1df   :  { %599 = vst.msk [vmem:[%s1178_s5 + $0x80] sm:$0xff] %vm582_vm1, %v520_v16  ;;  %v523_v20 = vadd.f32 %v1011_v44, %v522_v19 }
 0x1e0   :  { %602 = vst.msk [vmem:[%s1178_s5 + $0x98] sm:$0xff] %vm582_vm1, %v531_v18 }
 0x1e1   :  { %600 = vst.msk [vmem:[%s1178_s5 + $0x88] sm:$0xff] %vm582_vm1, %v523_v20 }
 0x1e3   :  { %v763_v21 = vpop.f32.mrb[16].mxu1 }
 0x1e4   :  { %v544_v22 = vadd.f32 %v763_v21, %v1011_v44  ;;  %v535_v23 = vpop.f32.mrb[17].mxu1 }
 0x1e5   :  { %v536_v24 = vadd.f32 %v1011_v44, %v535_v23  ;;  %v764_v25 = vpop.f32.mrb[18].mxu1 }
 0x1e6   :  { %605 = vst.msk [vmem:[%s1178_s5 + $0xb0] sm:$0xff] %vm582_vm1, %v544_v22  ;;  %v547_v26 = vadd.f32 %v764_v25, %v1011_v44  ;;  %v538_v27 = vpop.f32.mrb[19].mxu1 }
 0x1e7   :  { %603 = vst.msk [vmem:[%s1178_s5 + $0xa0] sm:$0xff] %vm582_vm1, %v536_v24  ;;  %v539_v28 = vadd.f32 %v1011_v44, %v538_v27 }
 0x1e8   :  { %606 = vst.msk [vmem:[%s1178_s5 + $0xb8] sm:$0xff] %vm582_vm1, %v547_v26 }
 0x1e9   :  { %604 = vst.msk [vmem:[%s1178_s5 + $0xa8] sm:$0xff] %vm582_vm1, %v539_v28 }
 0x1eb   :  { %v767_v29 = vpop.f32.mrb[20].mxu1 }
 0x1ec   :  { %v560_v30 = vadd.f32 %v767_v29, %v1011_v44  ;;  %v551_v31 = vpop.f32.mrb[21].mxu1 }
 0x1ed   :  { %v552_v32 = vadd.f32 %v1011_v44, %v551_v31  ;;  %v768_v33 = vpop.f32.mrb[22].mxu1 }
 0x1ee   :  { %609 = vst.msk [vmem:[%s1178_s5 + $0xd0] sm:$0xff] %vm582_vm1, %v560_v30  ;;  %v563_v34 = vadd.f32 %v768_v33, %v1011_v44  ;;  %v554_v35 = vpop.f32.mrb[23].mxu1 }
 0x1ef   :  { %607 = vst.msk [vmem:[%s1178_s5 + $0xc0] sm:$0xff] %vm582_vm1, %v552_v32  ;;  %v555_v36 = vadd.f32 %v1011_v44, %v554_v35 }
 0x1f0   :  { %610 = vst.msk [vmem:[%s1178_s5 + $0xd8] sm:$0xff] %vm582_vm1, %v563_v34 }
 0x1f1   :  { %608 = vst.msk [vmem:[%s1178_s5 + $0xc8] sm:$0xff] %vm582_vm1, %v555_v36 }
 0x1f3   :  { %v771_v37 = vpop.f32.mrb[24].mxu1 }
 0x1f4   :  { %v576_v38 = vadd.f32 %v771_v37, %v1011_v44  ;;  %v567_v39 = vpop.f32.mrb[25].mxu1 }
 0x1f5   :  { %v568_v40 = vadd.f32 %v1011_v44, %v567_v39  ;;  %v772_v41 = vpop.f32.mrb[26].mxu1 }
 0x1f6   :  { %613 = vst.msk [vmem:[%s1178_s5 + $0xf0] sm:$0xff] %vm582_vm1, %v576_v38  ;;  %v579_v42 = vadd.f32 %v772_v41, %v1011_v44  ;;  %v570_v43 = vpop.f32.mrb[27].mxu1 }
 0x1f7   :  { %611 = vst.msk [vmem:[%s1178_s5 + $0xe0] sm:$0xff] %vm582_vm1, %v568_v40  ;;  %v571_v45 = vadd.f32 %v1011_v44, %v570_v43 }
 0x1f8   :  { %614 = vst.msk [vmem:[%s1178_s5 + $0xf8] sm:$0xff] %vm582_vm1, %v579_v42 }
 0x1f9   :  { %612 = vst.msk [vmem:[%s1178_s5 + $0xe8] sm:$0xff] %vm582_vm1, %v571_v45 }

</bundles_post_ra>
